<compile_context>
chip_gen: v5e
topology: v5e:2x2
jax: 0.10.0
libtpu: 0.0.40
codegen_flags: <defaults>
</compile_context>

<pallas_src>
import functools

import jax
import jax.numpy as jnp
from jax import lax
from jax.experimental import pallas as pl
from jax.experimental.pallas import tpu as pltpu

NEGATIVE_SLOPE = 0.01   # args.negative_slope
LN_EPS = 1e-5           # nn.LayerNorm default eps


def _leaky_relu(x, slope):
    return jnp.where(x > 0, x, slope * x)


def _layer_norm(y, gamma, beta, eps):
    # one-pass statistics: var = E[y^2] - E[y]^2
    mu = jnp.mean(y, axis=-1, keepdims=True)
    ms = jnp.mean(y * y, axis=-1, keepdims=True)
    var = ms - mu * mu
    return (y - mu) * lax.rsqrt(var + eps) * gamma + beta


def encoder_kernel(x_ref, wqkv_ref, bqkv_ref, wo_ref, wf1_ref, bf1_ref,
                   wf2_ref, vec_ref, o_ref, *,
                   num_heads, scale, negative_slope, eps):
    bb, s, e = x_ref.shape
    he = num_heads * e
    rows = bb * s

    x3 = x_ref[...]                                    # (bb, s, e)  f32
    x2 = x3.reshape(rows, e)                           # (rows, e)

    # --- fused Q/K/V projection: one lane-dense (e, 3*h*e) MXU pass ----------
    qkv = jnp.dot(x2.astype(wqkv_ref.dtype), wqkv_ref[...],
                  preferred_element_type=jnp.float32) + bqkv_ref[...]

    # --- per-head attention (NOTE: this module applies no softmax) -----------
    # output projection folded into the head loop:
    #   concat_h(y_h) @ Wo == sum_h  y_h @ Wo[h*e:(h+1)*e, :]
    attn = jnp.zeros((rows, e), jnp.float32)
    for h in range(num_heads):                         # static unroll, H is small
        qh = (qkv[:, h * e:(h + 1) * e] * scale).reshape(bb, s, e)
        kh = qkv[:, he + h * e: he + (h + 1) * e].reshape(bb, s, e)
        vh = qkv[:, 2 * he + h * e: 2 * he + (h + 1) * e].reshape(bb, s, e)
        a = jnp.einsum('bqe,bke->bqk',
                       qh.astype(jnp.bfloat16), kh.astype(jnp.bfloat16),
                       preferred_element_type=jnp.float32)       # (bb, s, s)
        # att_dropout == identity (eval)
        yh = jnp.einsum('bqk,bke->bqe',
                        a.astype(jnp.bfloat16), vh.astype(jnp.bfloat16),
                        preferred_element_type=jnp.float32)      # (bb, s, e)
        attn = attn + jnp.dot(yh.reshape(rows, e).astype(wo_ref.dtype),
                              wo_ref[h * e:(h + 1) * e, :],
                              preferred_element_type=jnp.float32)

    vec = vec_ref[...]                                 # (8, e) packed params
    b_o, b_f2 = vec[0:1, :], vec[1:2, :]
    g1, beta1 = vec[2:3, :], vec[3:4, :]
    g2, beta2 = vec[4:5, :], vec[5:6, :]

    attn = attn + b_o                                  # output_layer bias
    # self_attention_dropout == identity (eval)
    r1 = _layer_norm(x2 + attn, g1, beta1, eps)        # LN1(x + A)

    # --- feed-forward network -------------------------------------------------
    h1 = jnp.dot(r1.astype(wf1_ref.dtype), wf1_ref[...],
                 preferred_element_type=jnp.float32) + bf1_ref[...]
    h1 = _leaky_relu(h1, negative_slope)
    f = jnp.dot(h1.astype(wf2_ref.dtype), wf2_ref[...],
                preferred_element_type=jnp.float32) + b_f2
    # ffn_dropout == identity (eval)
    out = x2 + _layer_norm(r1 + f, g2, beta2, eps)     # x + LN2(R1 + F)

    o_ref[...] = out.reshape(bb, s, e).astype(o_ref.dtype)


def fc_transformer_encoder_forward(x, params, *, num_heads, block_b=1,
                                   negative_slope=NEGATIVE_SLOPE, eps=LN_EPS):
    """x: (B, S, E) float32 -> (B, S, E) float32."""
    B, S, E = x.shape
    HE = num_heads * E
    FFN = params["w_f1"].shape[1]
    scale = float(E) ** (-0.5)

    x = x.astype(jnp.float32)
    nb = pl.cdiv(B, block_b)
    b_pad = nb * block_b
    if b_pad != B:                                     # handle ragged final block
        x = jnp.pad(x, ((0, b_pad - B), (0, 0), (0, 0)))

    # pack the six (E,)-sized vectors into one (8, E) tile -> one DMA.
    vec = jnp.zeros((8, E), jnp.float32)
    vec = vec.at[0].set(params["b_o"])
    vec = vec.at[1].set(params["b_f2"])
    vec = vec.at[2].set(params["ln1_g"])
    vec = vec.at[3].set(params["ln1_b"])
    vec = vec.at[4].set(params["ln2_g"])
    vec = vec.at[5].set(params["ln2_b"])

    kernel = functools.partial(encoder_kernel, num_heads=num_heads,
                               scale=scale, negative_slope=negative_slope,
                               eps=eps)

    def const2(i):
        return (0, 0)

    out = pl.pallas_call(
        kernel,
        out_shape=jax.ShapeDtypeStruct((b_pad, S, E), jnp.float32),
        grid_spec=pltpu.PrefetchScalarGridSpec(
            num_scalar_prefetch=0,
            grid=(nb,),
            in_specs=[
                pl.BlockSpec((block_b, S, E), lambda i: (i, 0, 0)),    # x
                pl.BlockSpec((E, 3 * HE), const2),                     # W_qkv (fused)
                pl.BlockSpec((1, 3 * HE), const2),                     # b_qkv
                pl.BlockSpec((HE, E), const2),                         # W_o
                pl.BlockSpec((E, FFN), const2),                        # W_f1
                pl.BlockSpec((1, FFN), const2),                        # b_f1
                pl.BlockSpec((FFN, E), const2),                        # W_f2
                pl.BlockSpec((8, E), const2),                          # packed vecs
            ],
            out_specs=pl.BlockSpec((block_b, S, E), lambda i: (i, 0, 0)),
        ),
        compiler_params=pltpu.CompilerParams(
            dimension_semantics=("parallel",)),
    )(x, params["w_qkv"], params["b_qkv"], params["w_o"],
      params["w_f1"], params["b_f1"], params["w_f2"], vec)

    return out[:B]


def init_params(key, *, embedding_size, num_heads, ffn_size, msa_bias=True):
    """Deterministic synthetic parameters (shapes match the nn.Module).

    Weights are stored (in, out) and in bf16 (MXU-native on v6e/v7x, half the
    weight DMA); biases / LayerNorm params stay f32.
    """
    E, H, F = embedding_size, num_heads, ffn_size
    HE = H * E
    ks = jax.random.split(key, 12)
    s = 0.1
    b_qkv = (s * jax.random.normal(ks[1], (1, 3 * HE), jnp.float32)
             if msa_bias else jnp.zeros((1, 3 * HE), jnp.float32))
    return {
        "w_qkv": (s * jax.random.normal(ks[0], (E, 3 * HE), jnp.float32)).astype(jnp.bfloat16),
        "b_qkv": b_qkv,
        "w_o":   (s * jax.random.normal(ks[2], (HE, E), jnp.float32)).astype(jnp.bfloat16),
        "b_o":    s * jax.random.normal(ks[3], (E,), jnp.float32),
        "w_f1":  (s * jax.random.normal(ks[4], (E, F), jnp.float32)).astype(jnp.bfloat16),
        "b_f1":   s * jax.random.normal(ks[5], (1, F), jnp.float32),
        "w_f2":  (s * jax.random.normal(ks[6], (F, E), jnp.float32)).astype(jnp.bfloat16),
        "b_f2":   s * jax.random.normal(ks[7], (E,), jnp.float32),
        "ln1_g":  1.0 + s * jax.random.normal(ks[8], (E,), jnp.float32),
        "ln1_b":  s * jax.random.normal(ks[9], (E,), jnp.float32),
        "ln2_g":  1.0 + s * jax.random.normal(ks[10], (E,), jnp.float32),
        "ln2_b":  s * jax.random.normal(ks[11], (E,), jnp.float32),
    }


def fc_transformer_encoder_ref(x, params, *, num_heads,
                               negative_slope=NEGATIVE_SLOPE, eps=LN_EPS):
    """Pure-JAX reference of the PyTorch forward (eval mode), using the same
    bf16-operand / f32-accumulate matmul convention as the kernel."""
    B, S, E = x.shape
    H = num_heads
    scale = float(E) ** (-0.5)

    def mm(a, w):
        return jnp.einsum('...i,ij->...j', a.astype(jnp.bfloat16),
                          w.astype(jnp.bfloat16),
                          preferred_element_type=jnp.float32)

    def ln(y, g, b):
        mu = y.mean(-1, keepdims=True)
        var = ((y - mu) ** 2).mean(-1, keepdims=True)
        return (y - mu) / jnp.sqrt(var + eps) * g + b

    qkv = mm(x, params["w_qkv"]) + params["b_qkv"][0]
    q, k, v = jnp.split(qkv, 3, axis=-1)

    def split_heads(t):                                # (B,S,H*E) -> (B,H,S,E)
        return t.reshape(B, S, H, E).transpose(0, 2, 1, 3)

    q = split_heads(q) * scale
    k = split_heads(k)
    v = split_heads(v)
    a = jnp.einsum('bhqe,bhke->bhqk', q.astype(jnp.bfloat16),
                   k.astype(jnp.bfloat16), preferred_element_type=jnp.float32)
    y = jnp.einsum('bhqk,bhke->bhqe', a.astype(jnp.bfloat16),
                   v.astype(jnp.bfloat16), preferred_element_type=jnp.float32)
    y = y.transpose(0, 2, 1, 3).reshape(B, S, H * E)
    attn = mm(y, params["w_o"]) + params["b_o"]

    r1 = ln(x + attn, params["ln1_g"], params["ln1_b"])
    h = mm(r1, params["w_f1"]) + params["b_f1"][0]
    h = jnp.where(h > 0, h, negative_slope * h)
    f = mm(h, params["w_f2"]) + params["b_f2"]
    return x + ln(r1 + f, params["ln2_g"], params["ln2_b"])


if __name__ == "__main__":
    # args: embedding_size=32, n_heads=4, encoder_ffn_size=64, negative_slope=0.01
    B, S, E, H, FFN = 2, 8, 32, 4, 64

    key = jax.random.PRNGKey(0)
    k_x, k_p = jax.random.split(key)
    x = jax.random.normal(k_x, (B, S, E), jnp.float32)
    params = init_params(k_p, embedding_size=E, num_heads=H, ffn_size=FFN)

    out = fc_transformer_encoder_forward(x, params, num_heads=H, block_b=1)
    out = jax.block_until_ready(out)

    ref = fc_transformer_encoder_ref(x, params, num_heads=H)
    assert out.shape == (B, S, E)
    max_diff = jnp.max(jnp.abs(out - ref))
    assert jnp.allclose(out, ref, atol=2e-3, rtol=2e-3), \
        f"max abs diff {max_diff}"

    print("KERNEL_OK")
</pallas_src>

<mosaic_0001>
module attributes {stable_mosaic.version = 11 : i64} {
  func.func @encoder_kernel(%arg0: i32, %arg1: memref<1x8x32xf32, #tpu.memory_space<vmem>>, %arg2: memref<32x384xbf16, #tpu.memory_space<vmem>>, %arg3: memref<1x384xf32, #tpu.memory_space<vmem>>, %arg4: memref<128x32xbf16, #tpu.memory_space<vmem>>, %arg5: memref<32x64xbf16, #tpu.memory_space<vmem>>, %arg6: memref<1x64xf32, #tpu.memory_space<vmem>>, %arg7: memref<64x32xbf16, #tpu.memory_space<vmem>>, %arg8: memref<8x32xf32, #tpu.memory_space<vmem>>, %arg9: memref<1x8x32xf32, #tpu.memory_space<vmem>>) attributes {dimension_semantics = [#tpu.dimension_semantics<parallel>], iteration_bounds = array<i64: 2>, scalar_prefetch = 0 : i64, scratch_operands = 0 : i64, tpu.core_type = #tpu.core_type<tc>, window_params = [{transform_indices = @transform_0, window_bounds = array<i64: 1, 8, 32>}, {pipeline_mode = #tpu.pipeline_mode<synchronous>, transform_indices = @transform_1, window_bounds = array<i64: 32, 384>}, {pipeline_mode = #tpu.pipeline_mode<synchronous>, transform_indices = @transform_2, window_bounds = array<i64: 1, 384>}, {pipeline_mode = #tpu.pipeline_mode<synchronous>, transform_indices = @transform_3, window_bounds = array<i64: 128, 32>}, {pipeline_mode = #tpu.pipeline_mode<synchronous>, transform_indices = @transform_4, window_bounds = array<i64: 32, 64>}, {pipeline_mode = #tpu.pipeline_mode<synchronous>, transform_indices = @transform_5, window_bounds = array<i64: 1, 64>}, {pipeline_mode = #tpu.pipeline_mode<synchronous>, transform_indices = @transform_6, window_bounds = array<i64: 64, 32>}, {pipeline_mode = #tpu.pipeline_mode<synchronous>, transform_indices = @transform_7, window_bounds = array<i64: 8, 32>}, {transform_indices = @transform_8, window_bounds = array<i64: 1, 8, 32>}]} {
    %c0 = arith.constant 0 : index
    %c0_0 = arith.constant 0 : index
    %c0_1 = arith.constant 0 : index
    %0 = vector.load %arg1[%c0, %c0_0, %c0_1] : memref<1x8x32xf32, #tpu.memory_space<vmem>>, vector<1x8x32xf32>
    %1 = vector.shape_cast %0 : vector<1x8x32xf32> to vector<8x32xf32>
    %2 = arith.truncf %1 : vector<8x32xf32> to vector<8x32xbf16>
    %c0_2 = arith.constant 0 : index
    %c0_3 = arith.constant 0 : index
    %3 = vector.load %arg2[%c0_2, %c0_3] : memref<32x384xbf16, #tpu.memory_space<vmem>>, vector<32x384xbf16>
    %cst = arith.constant dense<0.000000e+00> : vector<8x384xf32>
    %4 = tpu.matmul %2, %3, %cst {dimension_numbers = #tpu.dot_dimension_numbers<[1], [0], [0], [1], [0, 0, 1, 1], [], []>} : vector<8x32xbf16>, vector<32x384xbf16>, vector<8x384xf32> -> vector<8x384xf32>
    %c0_4 = arith.constant 0 : index
    %c0_5 = arith.constant 0 : index
    %5 = vector.load %arg3[%c0_4, %c0_5] : memref<1x384xf32, #tpu.memory_space<vmem>>, vector<1x384xf32>
    %6 = vector.broadcast %5 : vector<1x384xf32> to vector<8x384xf32>
    %7 = arith.addf %4, %6 : vector<8x384xf32>
    %cst_6 = arith.constant 0.000000e+00 : f32
    %8 = vector.broadcast %cst_6 : f32 to vector<8x32xf32>
    %9 = vector.extract_strided_slice %7 {offsets = [0, 0], sizes = [8, 32], strides = [1, 1]} : vector<8x384xf32> to vector<8x32xf32>
    %cst_7 = arith.constant 0.176776692 : f32
    %10 = vector.broadcast %cst_7 : f32 to vector<8x32xf32>
    %11 = arith.mulf %9, %10 : vector<8x32xf32>
    %12 = vector.shape_cast %11 : vector<8x32xf32> to vector<1x8x32xf32>
    %13 = vector.extract_strided_slice %7 {offsets = [0, 128], sizes = [8, 32], strides = [1, 1]} : vector<8x384xf32> to vector<8x32xf32>
    %14 = vector.shape_cast %13 : vector<8x32xf32> to vector<1x8x32xf32>
    %15 = vector.extract_strided_slice %7 {offsets = [0, 256], sizes = [8, 32], strides = [1, 1]} : vector<8x384xf32> to vector<8x32xf32>
    %16 = vector.shape_cast %15 : vector<8x32xf32> to vector<1x8x32xf32>
    %17 = arith.truncf %12 : vector<1x8x32xf32> to vector<1x8x32xbf16>
    %18 = arith.truncf %14 : vector<1x8x32xf32> to vector<1x8x32xbf16>
    "tpu.trace_start"() <{level = 10 : i32, message = "bqe,bke->bqk"}> : () -> ()
    %cst_8 = arith.constant dense<0.000000e+00> : vector<1x8x8xf32>
    %19 = tpu.matmul %17, %18, %cst_8 {dimension_numbers = #tpu.dot_dimension_numbers<[2], [2], [1], [1], [0, 0, 0, 1, 1, 1], [0], [0]>} : vector<1x8x32xbf16>, vector<1x8x32xbf16>, vector<1x8x8xf32> -> vector<1x8x8xf32>
    "tpu.trace_stop"() : () -> ()
    %20 = arith.truncf %19 : vector<1x8x8xf32> to vector<1x8x8xbf16>
    %21 = arith.truncf %16 : vector<1x8x32xf32> to vector<1x8x32xbf16>
    "tpu.trace_start"() <{level = 10 : i32, message = "bqk,bke->bqe"}> : () -> ()
    %cst_9 = arith.constant dense<0.000000e+00> : vector<1x8x32xf32>
    %22 = tpu.matmul %20, %21, %cst_9 {dimension_numbers = #tpu.dot_dimension_numbers<[2], [1], [1], [2], [0, 0, 0, 1, 1, 2], [0], [0]>} : vector<1x8x8xbf16>, vector<1x8x32xbf16>, vector<1x8x32xf32> -> vector<1x8x32xf32>
    "tpu.trace_stop"() : () -> ()
    %23 = vector.shape_cast %22 : vector<1x8x32xf32> to vector<8x32xf32>
    %24 = arith.truncf %23 : vector<8x32xf32> to vector<8x32xbf16>
    %c0_10 = arith.constant 0 : index
    %c0_11 = arith.constant 0 : index
    %25 = vector.load %arg4[%c0_10, %c0_11] : memref<128x32xbf16, #tpu.memory_space<vmem>>, vector<32x32xbf16>
    %cst_12 = arith.constant dense<0.000000e+00> : vector<8x32xf32>
    %26 = tpu.matmul %24, %25, %cst_12 {dimension_numbers = #tpu.dot_dimension_numbers<[1], [0], [0], [1], [0, 0, 1, 1], [], []>} : vector<8x32xbf16>, vector<32x32xbf16>, vector<8x32xf32> -> vector<8x32xf32>
    %27 = arith.addf %8, %26 : vector<8x32xf32>
    %28 = vector.extract_strided_slice %7 {offsets = [0, 32], sizes = [8, 32], strides = [1, 1]} : vector<8x384xf32> to vector<8x32xf32>
    %cst_13 = arith.constant 0.176776692 : f32
    %29 = vector.broadcast %cst_13 : f32 to vector<8x32xf32>
    %30 = arith.mulf %28, %29 : vector<8x32xf32>
    %31 = vector.shape_cast %30 : vector<8x32xf32> to vector<1x8x32xf32>
    %32 = vector.extract_strided_slice %7 {offsets = [0, 160], sizes = [8, 32], strides = [1, 1]} : vector<8x384xf32> to vector<8x32xf32>
    %33 = vector.shape_cast %32 : vector<8x32xf32> to vector<1x8x32xf32>
    %34 = vector.extract_strided_slice %7 {offsets = [0, 288], sizes = [8, 32], strides = [1, 1]} : vector<8x384xf32> to vector<8x32xf32>
    %35 = vector.shape_cast %34 : vector<8x32xf32> to vector<1x8x32xf32>
    %36 = arith.truncf %31 : vector<1x8x32xf32> to vector<1x8x32xbf16>
    %37 = arith.truncf %33 : vector<1x8x32xf32> to vector<1x8x32xbf16>
    "tpu.trace_start"() <{level = 10 : i32, message = "bqe,bke->bqk"}> : () -> ()
    %cst_14 = arith.constant dense<0.000000e+00> : vector<1x8x8xf32>
    %38 = tpu.matmul %36, %37, %cst_14 {dimension_numbers = #tpu.dot_dimension_numbers<[2], [2], [1], [1], [0, 0, 0, 1, 1, 1], [0], [0]>} : vector<1x8x32xbf16>, vector<1x8x32xbf16>, vector<1x8x8xf32> -> vector<1x8x8xf32>
    "tpu.trace_stop"() : () -> ()
    %39 = arith.truncf %38 : vector<1x8x8xf32> to vector<1x8x8xbf16>
    %40 = arith.truncf %35 : vector<1x8x32xf32> to vector<1x8x32xbf16>
    "tpu.trace_start"() <{level = 10 : i32, message = "bqk,bke->bqe"}> : () -> ()
    %cst_15 = arith.constant dense<0.000000e+00> : vector<1x8x32xf32>
    %41 = tpu.matmul %39, %40, %cst_15 {dimension_numbers = #tpu.dot_dimension_numbers<[2], [1], [1], [2], [0, 0, 0, 1, 1, 2], [0], [0]>} : vector<1x8x8xbf16>, vector<1x8x32xbf16>, vector<1x8x32xf32> -> vector<1x8x32xf32>
    "tpu.trace_stop"() : () -> ()
    %42 = vector.shape_cast %41 : vector<1x8x32xf32> to vector<8x32xf32>
    %43 = arith.truncf %42 : vector<8x32xf32> to vector<8x32xbf16>
    %c32 = arith.constant 32 : index
    %c0_16 = arith.constant 0 : index
    %44 = vector.load %arg4[%c32, %c0_16] : memref<128x32xbf16, #tpu.memory_space<vmem>>, vector<32x32xbf16>
    %cst_17 = arith.constant dense<0.000000e+00> : vector<8x32xf32>
    %45 = tpu.matmul %43, %44, %cst_17 {dimension_numbers = #tpu.dot_dimension_numbers<[1], [0], [0], [1], [0, 0, 1, 1], [], []>} : vector<8x32xbf16>, vector<32x32xbf16>, vector<8x32xf32> -> vector<8x32xf32>
    %46 = arith.addf %27, %45 : vector<8x32xf32>
    %47 = vector.extract_strided_slice %7 {offsets = [0, 64], sizes = [8, 32], strides = [1, 1]} : vector<8x384xf32> to vector<8x32xf32>
    %cst_18 = arith.constant 0.176776692 : f32
    %48 = vector.broadcast %cst_18 : f32 to vector<8x32xf32>
    %49 = arith.mulf %47, %48 : vector<8x32xf32>
    %50 = vector.shape_cast %49 : vector<8x32xf32> to vector<1x8x32xf32>
    %51 = vector.extract_strided_slice %7 {offsets = [0, 192], sizes = [8, 32], strides = [1, 1]} : vector<8x384xf32> to vector<8x32xf32>
    %52 = vector.shape_cast %51 : vector<8x32xf32> to vector<1x8x32xf32>
    %53 = vector.extract_strided_slice %7 {offsets = [0, 320], sizes = [8, 32], strides = [1, 1]} : vector<8x384xf32> to vector<8x32xf32>
    %54 = vector.shape_cast %53 : vector<8x32xf32> to vector<1x8x32xf32>
    %55 = arith.truncf %50 : vector<1x8x32xf32> to vector<1x8x32xbf16>
    %56 = arith.truncf %52 : vector<1x8x32xf32> to vector<1x8x32xbf16>
    "tpu.trace_start"() <{level = 10 : i32, message = "bqe,bke->bqk"}> : () -> ()
    %cst_19 = arith.constant dense<0.000000e+00> : vector<1x8x8xf32>
    %57 = tpu.matmul %55, %56, %cst_19 {dimension_numbers = #tpu.dot_dimension_numbers<[2], [2], [1], [1], [0, 0, 0, 1, 1, 1], [0], [0]>} : vector<1x8x32xbf16>, vector<1x8x32xbf16>, vector<1x8x8xf32> -> vector<1x8x8xf32>
    "tpu.trace_stop"() : () -> ()
    %58 = arith.truncf %57 : vector<1x8x8xf32> to vector<1x8x8xbf16>
    %59 = arith.truncf %54 : vector<1x8x32xf32> to vector<1x8x32xbf16>
    "tpu.trace_start"() <{level = 10 : i32, message = "bqk,bke->bqe"}> : () -> ()
    %cst_20 = arith.constant dense<0.000000e+00> : vector<1x8x32xf32>
    %60 = tpu.matmul %58, %59, %cst_20 {dimension_numbers = #tpu.dot_dimension_numbers<[2], [1], [1], [2], [0, 0, 0, 1, 1, 2], [0], [0]>} : vector<1x8x8xbf16>, vector<1x8x32xbf16>, vector<1x8x32xf32> -> vector<1x8x32xf32>
    "tpu.trace_stop"() : () -> ()
    %61 = vector.shape_cast %60 : vector<1x8x32xf32> to vector<8x32xf32>
    %62 = arith.truncf %61 : vector<8x32xf32> to vector<8x32xbf16>
    %c64 = arith.constant 64 : index
    %c0_21 = arith.constant 0 : index
    %63 = vector.load %arg4[%c64, %c0_21] : memref<128x32xbf16, #tpu.memory_space<vmem>>, vector<32x32xbf16>
    %cst_22 = arith.constant dense<0.000000e+00> : vector<8x32xf32>
    %64 = tpu.matmul %62, %63, %cst_22 {dimension_numbers = #tpu.dot_dimension_numbers<[1], [0], [0], [1], [0, 0, 1, 1], [], []>} : vector<8x32xbf16>, vector<32x32xbf16>, vector<8x32xf32> -> vector<8x32xf32>
    %65 = arith.addf %46, %64 : vector<8x32xf32>
    %66 = vector.extract_strided_slice %7 {offsets = [0, 96], sizes = [8, 32], strides = [1, 1]} : vector<8x384xf32> to vector<8x32xf32>
    %cst_23 = arith.constant 0.176776692 : f32
    %67 = vector.broadcast %cst_23 : f32 to vector<8x32xf32>
    %68 = arith.mulf %66, %67 : vector<8x32xf32>
    %69 = vector.shape_cast %68 : vector<8x32xf32> to vector<1x8x32xf32>
    %70 = vector.extract_strided_slice %7 {offsets = [0, 224], sizes = [8, 32], strides = [1, 1]} : vector<8x384xf32> to vector<8x32xf32>
    %71 = vector.shape_cast %70 : vector<8x32xf32> to vector<1x8x32xf32>
    %72 = vector.extract_strided_slice %7 {offsets = [0, 352], sizes = [8, 32], strides = [1, 1]} : vector<8x384xf32> to vector<8x32xf32>
    %73 = vector.shape_cast %72 : vector<8x32xf32> to vector<1x8x32xf32>
    %74 = arith.truncf %69 : vector<1x8x32xf32> to vector<1x8x32xbf16>
    %75 = arith.truncf %71 : vector<1x8x32xf32> to vector<1x8x32xbf16>
    "tpu.trace_start"() <{level = 10 : i32, message = "bqe,bke->bqk"}> : () -> ()
    %cst_24 = arith.constant dense<0.000000e+00> : vector<1x8x8xf32>
    %76 = tpu.matmul %74, %75, %cst_24 {dimension_numbers = #tpu.dot_dimension_numbers<[2], [2], [1], [1], [0, 0, 0, 1, 1, 1], [0], [0]>} : vector<1x8x32xbf16>, vector<1x8x32xbf16>, vector<1x8x8xf32> -> vector<1x8x8xf32>
    "tpu.trace_stop"() : () -> ()
    %77 = arith.truncf %76 : vector<1x8x8xf32> to vector<1x8x8xbf16>
    %78 = arith.truncf %73 : vector<1x8x32xf32> to vector<1x8x32xbf16>
    "tpu.trace_start"() <{level = 10 : i32, message = "bqk,bke->bqe"}> : () -> ()
    %cst_25 = arith.constant dense<0.000000e+00> : vector<1x8x32xf32>
    %79 = tpu.matmul %77, %78, %cst_25 {dimension_numbers = #tpu.dot_dimension_numbers<[2], [1], [1], [2], [0, 0, 0, 1, 1, 2], [0], [0]>} : vector<1x8x8xbf16>, vector<1x8x32xbf16>, vector<1x8x32xf32> -> vector<1x8x32xf32>
    "tpu.trace_stop"() : () -> ()
    %80 = vector.shape_cast %79 : vector<1x8x32xf32> to vector<8x32xf32>
    %81 = arith.truncf %80 : vector<8x32xf32> to vector<8x32xbf16>
    %c96 = arith.constant 96 : index
    %c0_26 = arith.constant 0 : index
    %82 = vector.load %arg4[%c96, %c0_26] : memref<128x32xbf16, #tpu.memory_space<vmem>>, vector<32x32xbf16>
    %cst_27 = arith.constant dense<0.000000e+00> : vector<8x32xf32>
    %83 = tpu.matmul %81, %82, %cst_27 {dimension_numbers = #tpu.dot_dimension_numbers<[1], [0], [0], [1], [0, 0, 1, 1], [], []>} : vector<8x32xbf16>, vector<32x32xbf16>, vector<8x32xf32> -> vector<8x32xf32>
    %84 = arith.addf %65, %83 : vector<8x32xf32>
    %c0_28 = arith.constant 0 : index
    %c0_29 = arith.constant 0 : index
    %85 = vector.load %arg8[%c0_28, %c0_29] : memref<8x32xf32, #tpu.memory_space<vmem>>, vector<8x32xf32>
    %86 = vector.extract_strided_slice %85 {offsets = [0, 0], sizes = [1, 32], strides = [1, 1]} : vector<8x32xf32> to vector<1x32xf32>
    %87 = vector.extract_strided_slice %85 {offsets = [1, 0], sizes = [1, 32], strides = [1, 1]} : vector<8x32xf32> to vector<1x32xf32>
    %88 = vector.extract_strided_slice %85 {offsets = [2, 0], sizes = [1, 32], strides = [1, 1]} : vector<8x32xf32> to vector<1x32xf32>
    %89 = vector.extract_strided_slice %85 {offsets = [3, 0], sizes = [1, 32], strides = [1, 1]} : vector<8x32xf32> to vector<1x32xf32>
    %90 = vector.extract_strided_slice %85 {offsets = [4, 0], sizes = [1, 32], strides = [1, 1]} : vector<8x32xf32> to vector<1x32xf32>
    %91 = vector.extract_strided_slice %85 {offsets = [5, 0], sizes = [1, 32], strides = [1, 1]} : vector<8x32xf32> to vector<1x32xf32>
    %92 = vector.broadcast %86 : vector<1x32xf32> to vector<8x32xf32>
    %93 = arith.addf %84, %92 : vector<8x32xf32>
    %94 = arith.addf %1, %93 : vector<8x32xf32>
    %cst_30 = arith.constant dense<0.000000e+00> : vector<8xf32>
    %95 = vector.multi_reduction <add>, %94, %cst_30 [1] : vector<8x32xf32> to vector<8xf32>
    %96 = vector.shape_cast %95 : vector<8xf32> to vector<8x1xf32>
    %cst_31 = arith.constant 3.200000e+01 : f32
    %97 = vector.broadcast %cst_31 : f32 to vector<8x1xf32>
    %98 = arith.divf %96, %97 : vector<8x1xf32>
    %99 = arith.mulf %94, %94 : vector<8x32xf32>
    %cst_32 = arith.constant dense<0.000000e+00> : vector<8xf32>
    %100 = vector.multi_reduction <add>, %99, %cst_32 [1] : vector<8x32xf32> to vector<8xf32>
    %101 = vector.shape_cast %100 : vector<8xf32> to vector<8x1xf32>
    %cst_33 = arith.constant 3.200000e+01 : f32
    %102 = vector.broadcast %cst_33 : f32 to vector<8x1xf32>
    %103 = arith.divf %101, %102 : vector<8x1xf32>
    %104 = arith.mulf %98, %98 : vector<8x1xf32>
    %105 = arith.subf %103, %104 : vector<8x1xf32>
    %106 = vector.broadcast %98 : vector<8x1xf32> to vector<8x32xf32>
    %107 = arith.subf %94, %106 : vector<8x32xf32>
    %cst_34 = arith.constant 9.99999974E-6 : f32
    %108 = vector.broadcast %cst_34 : f32 to vector<8x1xf32>
    %109 = arith.addf %105, %108 : vector<8x1xf32>
    %110 = math.rsqrt %109 : vector<8x1xf32>
    %111 = vector.broadcast %110 : vector<8x1xf32> to vector<8x32xf32>
    %112 = arith.mulf %107, %111 : vector<8x32xf32>
    %113 = vector.broadcast %88 : vector<1x32xf32> to vector<8x32xf32>
    %114 = arith.mulf %112, %113 : vector<8x32xf32>
    %115 = vector.broadcast %89 : vector<1x32xf32> to vector<8x32xf32>
    %116 = arith.addf %114, %115 : vector<8x32xf32>
    %117 = arith.truncf %116 : vector<8x32xf32> to vector<8x32xbf16>
    %c0_35 = arith.constant 0 : index
    %c0_36 = arith.constant 0 : index
    %118 = vector.load %arg5[%c0_35, %c0_36] : memref<32x64xbf16, #tpu.memory_space<vmem>>, vector<32x64xbf16>
    %cst_37 = arith.constant dense<0.000000e+00> : vector<8x64xf32>
    %119 = tpu.matmul %117, %118, %cst_37 {dimension_numbers = #tpu.dot_dimension_numbers<[1], [0], [0], [1], [0, 0, 1, 1], [], []>} : vector<8x32xbf16>, vector<32x64xbf16>, vector<8x64xf32> -> vector<8x64xf32>
    %c0_38 = arith.constant 0 : index
    %c0_39 = arith.constant 0 : index
    %120 = vector.load %arg6[%c0_38, %c0_39] : memref<1x64xf32, #tpu.memory_space<vmem>>, vector<1x64xf32>
    %121 = vector.broadcast %120 : vector<1x64xf32> to vector<8x64xf32>
    %122 = arith.addf %119, %121 : vector<8x64xf32>
    %cst_40 = arith.constant 0.000000e+00 : f32
    %123 = vector.broadcast %cst_40 : f32 to vector<8x64xf32>
    %124 = arith.cmpf ogt, %122, %123 : vector<8x64xf32>
    %cst_41 = arith.constant 0.00999999977 : f32
    %125 = vector.broadcast %cst_41 : f32 to vector<8x64xf32>
    %126 = arith.mulf %125, %122 : vector<8x64xf32>
    %127 = arith.select %124, %122, %126 : vector<8x64xi1>, vector<8x64xf32>
    %128 = arith.truncf %127 : vector<8x64xf32> to vector<8x64xbf16>
    %c0_42 = arith.constant 0 : index
    %c0_43 = arith.constant 0 : index
    %129 = vector.load %arg7[%c0_42, %c0_43] : memref<64x32xbf16, #tpu.memory_space<vmem>>, vector<64x32xbf16>
    %cst_44 = arith.constant dense<0.000000e+00> : vector<8x32xf32>
    %130 = tpu.matmul %128, %129, %cst_44 {dimension_numbers = #tpu.dot_dimension_numbers<[1], [0], [0], [1], [0, 0, 1, 1], [], []>} : vector<8x64xbf16>, vector<64x32xbf16>, vector<8x32xf32> -> vector<8x32xf32>
    %131 = vector.broadcast %87 : vector<1x32xf32> to vector<8x32xf32>
    %132 = arith.addf %130, %131 : vector<8x32xf32>
    %133 = arith.addf %116, %132 : vector<8x32xf32>
    %cst_45 = arith.constant dense<0.000000e+00> : vector<8xf32>
    %134 = vector.multi_reduction <add>, %133, %cst_45 [1] : vector<8x32xf32> to vector<8xf32>
    %135 = vector.shape_cast %134 : vector<8xf32> to vector<8x1xf32>
    %cst_46 = arith.constant 3.200000e+01 : f32
    %136 = vector.broadcast %cst_46 : f32 to vector<8x1xf32>
    %137 = arith.divf %135, %136 : vector<8x1xf32>
    %138 = arith.mulf %133, %133 : vector<8x32xf32>
    %cst_47 = arith.constant dense<0.000000e+00> : vector<8xf32>
    %139 = vector.multi_reduction <add>, %138, %cst_47 [1] : vector<8x32xf32> to vector<8xf32>
    %140 = vector.shape_cast %139 : vector<8xf32> to vector<8x1xf32>
    %cst_48 = arith.constant 3.200000e+01 : f32
    %141 = vector.broadcast %cst_48 : f32 to vector<8x1xf32>
    %142 = arith.divf %140, %141 : vector<8x1xf32>
    %143 = arith.mulf %137, %137 : vector<8x1xf32>
    %144 = arith.subf %142, %143 : vector<8x1xf32>
    %145 = vector.broadcast %137 : vector<8x1xf32> to vector<8x32xf32>
    %146 = arith.subf %133, %145 : vector<8x32xf32>
    %cst_49 = arith.constant 9.99999974E-6 : f32
    %147 = vector.broadcast %cst_49 : f32 to vector<8x1xf32>
    %148 = arith.addf %144, %147 : vector<8x1xf32>
    %149 = math.rsqrt %148 : vector<8x1xf32>
    %150 = vector.broadcast %149 : vector<8x1xf32> to vector<8x32xf32>
    %151 = arith.mulf %146, %150 : vector<8x32xf32>
    %152 = vector.broadcast %90 : vector<1x32xf32> to vector<8x32xf32>
    %153 = arith.mulf %151, %152 : vector<8x32xf32>
    %154 = vector.broadcast %91 : vector<1x32xf32> to vector<8x32xf32>
    %155 = arith.addf %153, %154 : vector<8x32xf32>
    %156 = arith.addf %1, %155 : vector<8x32xf32>
    %157 = vector.shape_cast %156 : vector<8x32xf32> to vector<1x8x32xf32>
    %c0_50 = arith.constant 0 : index
    %c0_51 = arith.constant 0 : index
    %c0_52 = arith.constant 0 : index
    %158 = vector.load %arg9[%c0_50, %c0_51, %c0_52] : memref<1x8x32xf32, #tpu.memory_space<vmem>>, vector<1x8x32xf32>
    tpu.vector_store %arg9[%c0_50, %c0_51, %c0_52], %157 {strides = array<i32>} : memref<1x8x32xf32, #tpu.memory_space<vmem>>, vector<1x8x32xf32>,
    return
  }
  func.func @transform_0(%arg0: i32) -> (i32, i32, i32) {
    %c0_i32 = arith.constant 0 : i32
    %c0_i32_0 = arith.constant 0 : i32
    %c0_i32_1 = arith.constant 0 : i32
    return %arg0, %c0_i32, %c0_i32_0 : i32, i32, i32
  }
  func.func @transform_1(%arg0: i32) -> (i32, i32) {
    %c0_i32 = arith.constant 0 : i32
    %c0_i32_0 = arith.constant 0 : i32
    %c0_i32_1 = arith.constant 0 : i32
    return %c0_i32, %c0_i32_0 : i32, i32
  }
  func.func @transform_2(%arg0: i32) -> (i32, i32) {
    %c0_i32 = arith.constant 0 : i32
    %c0_i32_0 = arith.constant 0 : i32
    %c0_i32_1 = arith.constant 0 : i32
    return %c0_i32, %c0_i32_0 : i32, i32
  }
  func.func @transform_3(%arg0: i32) -> (i32, i32) {
    %c0_i32 = arith.constant 0 : i32
    %c0_i32_0 = arith.constant 0 : i32
    %c0_i32_1 = arith.constant 0 : i32
    return %c0_i32, %c0_i32_0 : i32, i32
  }
  func.func @transform_4(%arg0: i32) -> (i32, i32) {
    %c0_i32 = arith.constant 0 : i32
    %c0_i32_0 = arith.constant 0 : i32
    %c0_i32_1 = arith.constant 0 : i32
    return %c0_i32, %c0_i32_0 : i32, i32
  }
  func.func @transform_5(%arg0: i32) -> (i32, i32) {
    %c0_i32 = arith.constant 0 : i32
    %c0_i32_0 = arith.constant 0 : i32
    %c0_i32_1 = arith.constant 0 : i32
    return %c0_i32, %c0_i32_0 : i32, i32
  }
  func.func @transform_6(%arg0: i32) -> (i32, i32) {
    %c0_i32 = arith.constant 0 : i32
    %c0_i32_0 = arith.constant 0 : i32
    %c0_i32_1 = arith.constant 0 : i32
    return %c0_i32, %c0_i32_0 : i32, i32
  }
  func.func @transform_7(%arg0: i32) -> (i32, i32) {
    %c0_i32 = arith.constant 0 : i32
    %c0_i32_0 = arith.constant 0 : i32
    %c0_i32_1 = arith.constant 0 : i32
    return %c0_i32, %c0_i32_0 : i32, i32
  }
  func.func @transform_8(%arg0: i32) -> (i32, i32, i32) {
    %c0_i32 = arith.constant 0 : i32
    %c0_i32_0 = arith.constant 0 : i32
    %c0_i32_1 = arith.constant 0 : i32
    return %arg0, %c0_i32, %c0_i32_0 : i32, i32, i32
  }
}

</mosaic_0001>

<bundles_post_ra>
// kernel: tpu_custom_call.1
= control target key start
LH: loop header
LB: loop body
LE: loop exit
PB: predicated region body
PF: predicated region fallthrough
CT: control target
= control target key end

     0   :  { %13 = vsyncpa [#allocation3], 0  ;;  %s1459_s0 = inlined_call_operand.vmem [shape: f32[2,8,32], index: 0, kind: input, shape index: {}]   ;;  %s1460_s1 = inlined_call_operand.vmem [shape: bf16[32,384], index: 1, kind: input, shape index: {}]   ;;  %s1461_s2 = inlined_call_operand.vmem [shape: f32[1,384], index: 2, kind: input, shape index: {}]   ;;  %s1462_s3 = inlined_call_operand.vmem [shape: bf16[128,32], index: 3, kind: input, shape index: {}]   ;;  %s1463_s4 = inlined_call_operand.vmem [shape: bf16[32,64], index: 4, kind: input, shape index: {}]   ;;  %s1464_s5 = inlined_call_operand.vmem [shape: f32[1,64], index: 5, kind: input, shape index: {}]   ;;  %s1465_s6 = inlined_call_operand.vmem [shape: bf16[64,32], index: 6, kind: input, shape index: {}]   ;;  %s1466_s7 = inlined_call_operand.vmem [shape: f32[8,32], index: 7, kind: input, shape index: {}]   ;;  %s1467_s8 = inlined_call_operand.hbm [shape: f32[2,8,32], index: 8, kind: output, shape index: {}]  }
   0x1   :  { %15 = vsyncpa [#allocation3 + $0x1], 0  ;;  %s1244_s27 = smov 0   ;;  %s1246_s28 = smov 0  }
   0x2   :  { %s1248_s29 = smov 0   ;;  %s1250_s30 = smov 0  }
   0x3 LB: > { %s1265_s9 = sadd.s32 4294967295, %s1193_s30   ;;  %s954_s10 = sadd.s32 4294967294, %s1193_s30   ;;  %s1193_s30 = sphi %s1250_s30, %s1473_s30   ;;  %s1189_s29 = sphi %s1248_s29, %s1472_s29   ;;  %s1185_s28 = sphi %s1246_s28, %s1471_s28   ;;  %s1181_s27 = sphi %s1244_s27, %s1470_s27  }
   0x4   : > { %s1269_s11 = sadd.s32 1, %s1193_s30   ;;  %s201_s12 = sadd.s32 1, %s1189_s29 }
   0x5   : > { %s198_s13 = ssub.s32 %s1193_s30, %s1269_s11  ;;  %p211_p0 = scmp.ne.s32.totalorder %s1189_s29, %s1185_s28 }
   0x6   : > { %p199_p1 = scmp.eq.s32.totalorder %s198_s13, 0  ;;  %p212_p2 = scmp.eq.s32.totalorder %s1265_s9, 1 }
   0x7   : > { %p217_p3 = scmp.ne.s32.totalorder %s1185_s28, %s1181_s27  ;;  %p218_p4 = scmp.eq.s32.totalorder %s954_s10, 1 }
   0x8   : > { %s1280_s14 = scalar_select %p199_p1, %s1189_s29, %s201_s12  }
   0x9   : > { %p1282_p5 = por %p212_p2, %p211_p0  ;;  %p1286_p6 = por %p218_p4, %p217_p3 }
   0xa   : > { %p957_p7 = scmp.ge.s32.totalorder %s1193_s30, 1  ;;  %p264_p8 = scmp.lt.s32.totalorder %s1193_s30, 3 }
   0xc   : > { %p265_p9 = pnand %p957_p7, %p264_p8 }
   0xd   : > { %p297_p10 = scmp.lt.s32.totalorder (!%p265_p9), %s1265_s9, 1  ;;  %s1195_s22 = smov (!%p265_p9), 32  }
   0xe   : > { %268 = sbr.rel (%p265_p9) target bundleno = 1420 (0x58c), region = 52  ;;  %s1196_s23 = smov (!%p265_p9), 64  }
   0xf   : > { %s1197_s24 = smov (!%p265_p9), 96   ;;  %s294_s18 = sand.u32 (!%p265_p9), 1, %s1185_s28  }
  0x10   : > { %s1058_s20 = sshll.u32 (!%p265_p9), %s1265_s9, 3 }
  0x13   : > { %v974_v0 = vld [vmem:[%s1460_s1 + $0x18] sm:$0xf]  ;;  %v1065_v1 = vld [vmem:[%s1460_s1 + $0x20] sm:$0xf0]  ;;  %v1064_v2 = vld [vmem:[%s1460_s1 + $0x1c] sm:$0xf] }
  0x14   : > { %v975_v3 = vor.u32 %v1065_v1, %v974_v0  ;;  %v976_v4 = vld [vmem:[%s1460_s1 + $0x24] sm:$0xf0]  ;;  %v962_v5 = vld [vmem:[%s1460_s1] sm:$0xf]  ;;  %v1062_v6 = vld [vmem:[%s1460_s1 + $0x8] sm:$0xf0] }
  0x15   : > { %v979_v7 = vor.u32 %v1064_v2, %v976_v4  ;;  %v1061_v8 = vld [vmem:[%s1460_s1 + $0x4] sm:$0xf]  ;;  %v964_v9 = vld [vmem:[%s1460_s1 + $0xc] sm:$0xf0]  ;;  %v963_v10 = vor.u32 %v1062_v6, %v962_v5  ;;  %v982_v11 = vld [vmem:[%s1460_s1 + $0x20] sm:$0xf] }
  0x16   : > { %362 = vmatpush.bf16.msra.mxu0 %v975_v3  ;;  %v1066_v12 = vld [vmem:[%s1460_s1 + $0x28] sm:$0xf0]  ;;  %v970_v13 = vld [vmem:[%s1460_s1 + $0x8] sm:$0xf]  ;;  %v967_v14 = vor.u32 %v1061_v8, %v964_v9  ;;  %s298_s26 = scalar_select %p297_p10, %s1265_s9, 1  ;;  %vm352_vm0 = vcmask 261120  }
  0x17   : > { %375 = vmatpush.bf16.msra.mxu1 %v979_v7  ;;  %v983_v15 = vor.u32 %v1066_v12, %v982_v11  ;;  %v1063_v16 = vld [vmem:[%s1460_s1 + $0x10] sm:$0xf0]  ;;  %v312_v20 = vld [vmem:[%s1461_s2] sm:$0x7]  ;;  %vm423_vm1 = vcmask 1043456   ;;  %v1068_v45 = vld [vmem:[%s1462_s3 + $0x8] sm:$0xff] }
  0x18   : > { %s959_s13 = sshll.u32 %s298_s26, 3  ;;  %v971_v17 = vor.u32 %v1063_v16, %v970_v13  ;;  %v314_v21 = vperm.slane %v312_v20, 0  ;;  %v315_v22 = vperm.slane %v312_v20, 1  ;;  %v316_v37 = vperm.slane %v312_v20, 2  ;;  %v1067_v46 = vld [vmem:[%s1462_s3] sm:$0xff]  ;;  %v1070_v3 = vld [vmem:[%s1462_s3 + $0x18] sm:$0xff] }
  0x19   : > { %388 = vmatpush.bf16.msra.mxu2 %v983_v15  ;;  %s300_s19 = scalar_lea.vmem %s1459_s0, %s959_s13  ;;  %vm419_vm2 = vcmask 64512   ;;  %v1069_v11 = vld [vmem:[%s1462_s3 + $0x10] sm:$0xff]  ;;  %v1072_v12 = vld [vmem:[%s1462_s3 + $0x28] sm:$0xff]  ;;  %v1071_v13 = vld [vmem:[%s1462_s3 + $0x20] sm:$0xff]  ;;  %vm831_vm8 = vcmask 523264   ;;  %s880_s9 = scalar_lea.sflag [#allocation3], %s294_s18 }
  0x1a   : > { %363 = vmatpush.bf16.msra.mxu0 %v963_v10  ;;  %v1333_v18 = vld [vmem:[%s300_s19] sm:$0xff]  ;;  %s958_s19 = sshll.u32 %s294_s18, 3 }
  0x1b   : > { %376 = vmatpush.bf16.msra.mxu1 %v967_v14  ;;  %v303_v19 = vpack.c.bf16 %v1333_v18, %v1333_v18 }
  0x1d   : > { %389 = vmatpush.bf16.msra.mxu2 %v971_v17  ;;  %984 = vmatmul.msk.bf16.vlgmr.msra.gmra.mxu0 %vm352_vm0, %v303_v19 }
  0x1e   : > { %985 = vmatmul.msk.bf16.vlgmr.msra.gmra.mxu1 %vm352_vm0, %v303_v19 }
  0x20   : > { %986 = vmatmul.msk.bf16.vlgmr.msra.gmra.mxu2 %vm352_vm0, %v303_v19 }
  0x9a   : > { %v365_v23 = vpop.f32.mrf.mxu0 }
  0x9b   : > { %v378_v24 = vpop.f32.mrf.mxu1  ;;  %v366_v25 = vadd.f32 %v365_v23, %v314_v21 }
  0x9c   : > { %v379_v26 = vadd.f32 %v378_v24, %v315_v22 }
  0x9d   : > { %v395_v27 = vmul.f32 0.17677669, %v366_v25 }
  0x9e   : > { %v397_v28 = vpack.c.bf16 %v379_v26, %v379_v26  ;;  %v1074_v26 = vld [vmem:[%s1462_s3 + $0x38] sm:$0xff] }
  0x9f   : > { %v396_v29 = vpack.c.bf16 %v395_v27, %v395_v27  ;;  %v1073_v27 = vld [vmem:[%s1462_s3 + $0x30] sm:$0xff] }
  0xa0   : > { %v451_v30 = vunpack.c.l.b16 %v397_v28  ;;  %v402_v31 = vsel %vm352_vm0, %v397_v28, 0 }
  0xa1   : > { %411 = vmatpush.bf16.xpose.msra.mxu3 %v402_v31  ;;  %v446_v35 = vunpack.c.l.b16 %v396_v29 }
  0xa2   : > { %v452_v32 = vpack.c.b16 %v451_v30, %v451_v30  ;;  %v367_v33 = vpop.f32.mrf.mxu0 }
  0xa3   : > { %v380_v34 = vpop.f32.mrf.mxu1  ;;  %v447_v36 = vpack.c.b16 %v446_v35, %v446_v35  ;;  %v391_v38 = vpop.f32.mrf.mxu2 }
  0xa4   : > { %641 = vrot.lane.b32.xlu2 %v452_v32, %s1195_s22  ;;  %562 = vrot.lane.b32.xlu1 %v452_v32, %s1196_s23  ;;  %v392_v39 = vadd.f32 %v391_v38, %v316_v37  ;;  %v1390_v37 = vld [vmem:[%s1466_s7] sm:$0xff] }
  0xa5   : > { %453 = vrot.lane.b32.xlu0 %v452_v32, %s1197_s24  ;;  %v719_v38 = vperm.slane %v1390_v37, 0 }
  0xa6   : > { %v418_v40 = vpack.c.bf16 %v392_v39, %v392_v39 }
  0xa8   : > { %987 = vmatmul.msk.bf16.vlgmr.msra.gmra.mxu3 %vm352_vm0, %v396_v29  ;;  %v476_v41 = vunpack.c.l.b16 %v418_v40  ;;  %v425_v44 = vsel %vm423_vm1, %v418_v40, 0 }
  0xa9   : > { %434 = vmatpush.bf16.msrb.mxu0 %v425_v44  ;;  %525 = vmatpush.bf16.msrb.mxu3 %v1070_v3 }
  0xaa   : > { %v477_v42 = vpack.c.b16 %v476_v41, %v476_v41 }
  0xab   : > { %v393_v43 = vpop.f32.mrf.mxu2 }
  0xac   : > { %639 = vrot.lane.b32.xlu2 %v447_v36, %s1195_s22  ;;  %560 = vrot.lane.b32.xlu1 %v447_v36, %s1196_s23 }
  0xad   : > { %448 = vrot.lane.b32.xlu0 %v447_v36, %s1197_s24  ;;  %553 = vmatpush.bf16.msra.mxu0 %v1068_v45 }
  0xae   : > { %526 = vmatpush.bf16.msrb.mxu3 %v1069_v11  ;;  %v755_v11 = vperm.slane %v1390_v37, 3 }
  0xb1   : > { %554 = vmatpush.bf16.msra.mxu0 %v1067_v46 }
  0xb2   : > { %631 = vmatpush.bf16.msra.mxu3 %v1072_v12 }
  0xb4   : > { %663 = vrot.lane.b32.xlu2 %v477_v42, %s1195_s22  ;;  %584 = vrot.lane.b32.xlu1 %v477_v42, %s1196_s23  ;;  %s890_s23 = scalar_lea.hbm %s1467_s8, %s1058_s20 }
  0xb5   : > { %478 = vrot.lane.b32.xlu0 %v477_v42, %s1197_s24  ;;  %s296_s24 = scalar_lea.vmem [#allocation2], %s958_s19  ;;  %s894_s26 = sshll.u32 %s890_s23, 4  ;;  %s895_s26 = int_to_ptr.hbm [resolvable:$true] %s894_s26 }
  0xb6   : > { %632 = vmatpush.bf16.msra.mxu3 %v1071_v13  ;;  %s892_s25 = sshll.u32 %s296_s24, 4  ;;  %s1145_s10 = sshra.s32 %s895_s26, 4  ;;  %s893_s25 = int_to_ptr.vmem [resolvable:$true] %s892_s25  ;;  %s1146_s10 = int_to_ptr.hbm [resolvable:$true] %s1145_s10 }
  0xb7   : > { %s1147_s12 = scalar_lea.hbm %s1146_s10, 8  ;;  %s1151_s19 = scalar_lea.hbm %s1467_s8, 16 }
  0xb8   : > { %p1148_p11 = scmp.ne.s32.totalorder %s1146_s10, %s1147_s12  ;;  %p1152_p0 = scmp.lt.s32.totalorder %s1146_s10, %s1467_s8 }
  0xb9   : > { %p1153_p1 = scmp.lt.s32.totalorder %s1151_s19, %s1147_s12 }
  0xba   : > { %p1149_p12 = pnand %p1148_p11, %p1282_p5 }
  0xbb   : > { %p1154_p2 = por %p1153_p1, %p1152_p0 }
  0xbc   : > { %p1150_p13 = pneg %p1149_p12 }
  0xbe   : > { %p1155_p3 = pnand %p1154_p2, %p1150_p13 }
  0xfe   : > { %v642_v52 = vpop.permute.xlu2 %641 }
  0xff   : > { %v647_v55 = vsel %vm352_vm0, %v642_v52, 0 }
 0x106   : > { %v640_v58 = vpop.permute.xlu2 %639 }
 0x10e   : > { %v664_v59 = vpop.permute.xlu2 %663 }
 0x10f   : > { %v669_v60 = vsel %vm423_vm1, %v664_v59, 0 }
 0x116   : > { %v563_v47 = vpop.permute.xlu1 %562 }
 0x117   : > { %v568_v48 = vsel %vm352_vm0, %v563_v47, 0  ;;  %v454_v49 = vpop.permute.xlu0 %453  ;;  %v1198_v47 = vmov 32.0  }
 0x118   : > { %v459_v50 = vsel %vm352_vm0, %v454_v49, 0  ;;  %1125 = vrcp.f32 %v1198_v47 }
 0x119   : > { %468 = vmatpush.bf16.xpose.msrb.mxu1 %v459_v50 }
 0x11e   : > { %v561_v56 = vpop.permute.xlu1 %560 }
 0x11f   : > { %v449_v51 = vpop.permute.xlu0 %448 }
 0x120   : > { %989 = vmatmul.msk.bf16.vlgmr.msrb.gmra.mxu1 %vm352_vm0, %v449_v51 }
 0x121   : > { %577 = vmatpush.bf16.xpose.msra.mxu1 %v568_v48  ;;  %v1126_v48 = vpop.eup %1125 }
 0x122   : > { %v726_v49 = vmul.f32 32.0, %v1126_v48  ;;  %vm730_vm3 = vweird.f32 %v1126_v48 }
 0x124   : > { %v727_v50 = vsub.f32 1.0, %v726_v49 }
 0x126   : > { %v585_v62 = vpop.permute.xlu1 %584  ;;  %v728_v51 = vmul.f32 %v1126_v48, %v727_v50 }
 0x127   : > { %v479_v61 = vpop.permute.xlu0 %478  ;;  %v590_v0 = vsel %vm423_vm1, %v585_v62, 0 }
 0x128   : > { %v484_v63 = vsel %vm423_vm1, %v479_v61, 0  ;;  %v729_v52 = vadd.f32 %v1126_v48, %v728_v51  ;;  %v1080_v61 = vld [vmem:[%s1465_s6 + $0x18] sm:$0xff]  ;;  %v875_v51 = vperm.slane %v1390_v37, 5 }
 0x129   : > { %678 = vmatpush.bf16.msrb.mxu1 %v669_v60  ;;  %493 = vmatpush.bf16.msrb.mxu2 %v484_v63  ;;  %v1079_v63 = vld [vmem:[%s1465_s6 + $0x10] sm:$0xff] }
 0x12b   : > { %v413_v53 = vpop.f32.mrf.mxu3 }
 0x12c   : > { %v417_v54 = vpack.c.bf16 %v413_v53, %v413_v53  ;;  %v1076_v53 = vld [vmem:[%s1463_s4 + $0x8] sm:$0xff] }
 0x12d   : > { %599 = vmatpush.bf16.msra.mxu2 %v590_v0 }
 0x12e   : > { %988 = vmatmul.msk.bf16.vlgmr.msrb.gmra.mxu0 %vm419_vm2, %v417_v54  ;;  %v1075_v54 = vld [vmem:[%s1463_s4] sm:$0xff] }
 0x12f   : > { %656 = vmatpush.bf16.xpose.msrb.mxu0 %v647_v55  ;;  %v731_v55 = vsel %vm730_vm3, %v1126_v48, %v729_v52  ;;  %v873_v48 = vperm.slane %v1390_v37, 4 }
 0x130   : > { %1009 = vmatmul.msk.bf16.vlgmr.msra.gmra.mxu1 %vm352_vm0, %v561_v56 }
 0x133   : > { %v415_v57 = vpop.f32.mrf.mxu3 }
 0x19d   : > { %v470_v1 = vpop.f32.mrf.mxu1 }
 0x19e   : > { %v474_v2 = vpack.c.bf16 %v470_v1, %v470_v1 }
 0x1a0   : > { %990 = vmatmul.msk.bf16.vlgmr.msrb.gmra.mxu2 %vm419_vm2, %v474_v2 }
 0x1a1   : > { %710 = vmatpush.bf16.msrb.mxu2 %v1074_v26 }
 0x1a5   : > { %v472_v4 = vpop.f32.mrf.mxu1  ;;  %711 = vmatpush.bf16.msrb.mxu2 %v1073_v27 }
 0x1ab   : > { %v436_v5 = vpop.f32.mrf.mxu0 }
 0x1ac   : > { %v440_v6 = vpack.c.bf16 %v436_v5, %v436_v5 }
 0x1ad   : > { %v579_v7 = vpop.f32.mrf.mxu1 }
 0x1ae   : > { %v583_v8 = vpack.c.bf16 %v579_v7, %v579_v7  ;;  %1008 = vmatmul.msk.bf16.vlgmr.msra.gmra.mxu0 %vm352_vm0, %v440_v6 }
 0x1af   : > { %839 = vmatpush.bf16.msra.mxu0 %v1080_v61 }
 0x1b0   : > { %1010 = vmatmul.msk.bf16.vlgmr.msra.gmra.mxu2 %vm419_vm2, %v583_v8  ;;  %v753_v8 = vperm.slane %v1390_v37, 2 }
 0x1b3   : > { %v438_v9 = vpop.f32.mrf.mxu0  ;;  %840 = vmatpush.bf16.msra.mxu0 %v1079_v63 }
 0x1b5   : > { %v581_v10 = vpop.f32.mrf.mxu1 }
 0x1be   : > { %1020 = vmatmul.msk.bf16.vlgmr.msrb.gmra.mxu0 %vm352_vm0, %v640_v58 }
 0x223   : > { %v495_v14 = vpop.f32.mrf.mxu2 }
 0x224   : > { %v499_v15 = vpack.c.bf16 %v495_v14, %v495_v14 }
 0x226   : > { %999 = vmatmul.msk.bf16.vlgmr.msrb.gmra.mxu3 %vm352_vm0, %v499_v15  ;;  %v1078_v15 = vld [vmem:[%s1465_s6 + $0x8] sm:$0xff] }
 0x227   : > { %787 = vmatpush.bf16.msrb.mxu3 %v1076_v53  ;;  %841 = vmatpush.bf16.msra.mxu0 %v1078_v15 }
 0x22b   : > { %v497_v16 = vpop.f32.mrf.mxu2  ;;  %v556_v17 = vpop.f32.mrf.mxu0  ;;  %788 = vmatpush.bf16.msrb.mxu3 %v1075_v54 }
 0x22c   : > { %v1077_v16 = vld [vmem:[%s1465_s6] sm:$0xff] }
 0x22d   : > { %842 = vmatpush.bf16.msra.mxu0 %v1077_v16 }
 0x233   : > { %v601_v19 = vpop.f32.mrf.mxu2  ;;  %v558_v20 = vpop.f32.mrf.mxu0 }
 0x234   : > { %v605_v21 = vpack.c.bf16 %v601_v19, %v601_v19 }
 0x236   : > { %1019 = vmatmul.msk.bf16.vlgmr.msra.gmra.mxu3 %vm352_vm0, %v605_v21 }
 0x23b   : > { %v603_v22 = vpop.f32.mrf.mxu2  ;;  %v658_v23 = vpop.f32.mrf.mxu0 }
 0x23c   : > { %v662_v24 = vpack.c.bf16 %v658_v23, %v658_v23 }
 0x23e   : > { %1021 = vmatmul.msk.bf16.vlgmr.msrb.gmra.mxu1 %vm419_vm2, %v662_v24 }
 0x243   : > { %v660_v25 = vpop.f32.mrf.mxu0 }
 0x244   : > { %v806_v25 = vperm.slane %v1390_v37, 1 }
 0x2a9   : > { %v528_v28 = vpop.f32.mrf.mxu3 }
 0x2aa   : > { %v557_v30 = vadd.f32 %v556_v17, %v528_v28  ;;  %v1124_v17 = vld [vmem:[%s1464_s5] ss:$0 sm:$0xff] }
 0x2b1   : > { %v530_v29 = vpop.f32.mrf.mxu3 }
 0x2b9   : > { %v634_v31 = vpop.f32.mrf.mxu3 }
 0x2ba   : > { %v638_v32 = vadd.f32 %v634_v31, %v557_v30 }
 0x2bb   : > { %v680_v33 = vpop.f32.mrf.mxu1 }
 0x2bc   : > { %v684_v34 = vpack.c.bf16 %v680_v33, %v680_v33 }
 0x2be   : > { %1030 = vmatmul.msk.bf16.vlgmr.msrb.gmra.mxu2 %vm352_vm0, %v684_v34 }
 0x2c1   : > { %v636_v35 = vpop.f32.mrf.mxu3 }
 0x2c3   : > { %v682_v36 = vpop.f32.mrf.mxu1 }
 0x341   : > { %v713_v39 = vpop.f32.mrf.mxu2 }
 0x342   : > { %v717_v40 = vadd.f32 %v713_v39, %v638_v32 }
 0x344   : > { %v720_v41 = vadd.f32 %v719_v38, %v717_v40 }
 0x346   : > { %v721_v42 = vadd.f32 %v720_v41, %v1333_v18 }
 0x348   : > { %v722_v43 = vsel %vm352_vm0, %v721_v42, 0.0  ;;  %v733_v44 = vmul.f32 %v721_v42, %v721_v42 }
 0x349   : > { %v715_v45 = vpop.f32.mrf.mxu2  ;;  %723 = vadd.xlane.f32.xlu0 %v722_v43 }
 0x34a   : > { %v734_v46 = vsel %vm352_vm0, %v733_v44, 0.0 }
 0x34b   : > { %735 = vadd.xlane.f32.xlu1 %v734_v46 }
 0x3bc   : > { %v724_v56 = vpop.xlane.xlu0 %723 }
 0x3bd   : > { %v732_v57 = vmul.f32 %v731_v55, %v724_v56 }
 0x3be   : > { %v736_v58 = vpop.xlane.xlu1 %735 }
 0x3bf   : > { %v738_v59 = vmul.f32 %v732_v57, %v732_v57  ;;  %v737_v60 = vmul.f32 %v736_v58, %v731_v55  ;;  %v740_v7 = vsub.f32 %v721_v42, %v732_v57 }
 0x3c1   : > { %v739_v62 = vsub.f32 %v737_v60, %v738_v59 }
 0x3c3   : > { %v741_v0 = vadd.f32 1e-05, %v739_v62 }
 0x3c5   : > { %1127 = vrsqrt.f32 %v741_v0  ;;  %vm748_vm5 = vweird.f32 %v741_v0 }
 0x3cb   : > { %v1128_v1 = vpop.eup %1127 }
 0x3cc   : > { %v743_v2 = vmul.f32 %v1128_v1, %v741_v0  ;;  %vm749_vm4 = vweird.f32 %v1128_v1 }
 0x3cd   : > { %vm750_vm6 = vmor %vm748_vm5, %vm749_vm4 }
 0x3ce   : > { %v744_v3 = vmul.f32 %v1128_v1, %v743_v2 }
 0x3d0   : > { %v745_v4 = vmul.f32 0.5, %v744_v3 }
 0x3d2   : > { %v746_v5 = vsub.f32 1.5, %v745_v4 }
 0x3d4   : > { %v747_v6 = vmul.f32 %v1128_v1, %v746_v5 }
 0x3d6   : > { %v751_v9 = vsel %vm750_vm6, %v1128_v1, %v747_v6 }
 0x3d7   : > { %v752_v10 = vmul.f32 %v751_v9, %v740_v7 }
 0x3d9   : > { %v754_v12 = vmul.f32 %v753_v8, %v752_v10 }
 0x3db   : > { %v756_v13 = vadd.f32 %v755_v11, %v754_v12 }
 0x3dd   : > { %v757_v14 = vpack.c.bf16 %v756_v13, %v756_v13 }
 0x3df   : > { %1039 = vmatmul.msk.bf16.vlgmr.msrb.gmra.mxu3 %vm352_vm0, %v757_v14 }
 0x462   : > { %v790_v19 = vpop.f32.mrf.mxu3 }
 0x463   : > { %v791_v20 = vadd.f32 %v1124_v17, %v790_v19 }
 0x465   : > { %vm794_vm7 = vcmp.gt.f32.partialorder %v791_v20, 0.0  ;;  %v795_v21 = vmul.f32 0.01, %v791_v20 }
 0x467   : > { %v796_v22 = vsel %vm794_vm7, %v791_v20, %v795_v21 }
 0x468   : > { %v797_v23 = vpack.c.bf16 %v796_v22, %v796_v22 }
 0x46a   : > { %v792_v24 = vpop.f32.mrf.mxu3  ;;  %1056 = vmatmul.msk.bf16.vlgmr.msra.gmra.mxu0 %vm831_vm8, %v797_v23 }
 0x4e7   : > { %v844_v26 = vpop.f32.mrf.mxu0 }
 0x4e8   : > { %v845_v27 = vadd.f32 %v844_v26, %v806_v25 }
 0x4ea   : > { %v848_v28 = vadd.f32 %v845_v27, %v756_v13 }
 0x4ec   : > { %v849_v29 = vsel %vm352_vm0, %v848_v28, 0.0  ;;  %v853_v31 = vmul.f32 %v848_v28, %v848_v28 }
 0x4ed   : > { %850 = vadd.xlane.f32.xlu2 %v849_v29 }
 0x4ee   : > { %v854_v32 = vsel %vm352_vm0, %v853_v31, 0.0 }
 0x4ef   : > { %v846_v30 = vpop.f32.mrf.mxu0 }
 0x4f5   : > { %855 = vadd.xlane.f32.xlu2 %v854_v32 }
 0x560   : > { %v851_v33 = vpop.xlane.xlu2 %850 }
 0x561   : > { %v852_v34 = vmul.f32 %v851_v33, %v731_v55 }
 0x563   : > { %v858_v36 = vmul.f32 %v852_v34, %v852_v34  ;;  %v860_v47 = vsub.f32 %v848_v28, %v852_v34 }
 0x568   : > { %v856_v35 = vpop.xlane.xlu2 %855 }
 0x569   : > { %v857_v38 = vmul.f32 %v856_v35, %v731_v55 }
 0x56b   : > { %v859_v39 = vsub.f32 %v857_v38, %v858_v36 }
 0x56d   : > { %v861_v40 = vadd.f32 1e-05, %v859_v39 }
 0x56f   : > { %1129 = vrsqrt.f32 %v861_v40  ;;  %vm868_vm10 = vweird.f32 %v861_v40 }
 0x575   : > { %v1130_v41 = vpop.eup %1129 }
 0x576   : > { %v863_v42 = vmul.f32 %v1130_v41, %v861_v40  ;;  %vm869_vm9 = vweird.f32 %v1130_v41 }
 0x577   : > { %vm870_vm11 = vmor %vm868_vm10, %vm869_vm9 }
 0x578   : > { %v864_v43 = vmul.f32 %v1130_v41, %v863_v42 }
 0x57a   : > { %v865_v44 = vmul.f32 0.5, %v864_v43 }
 0x57c   : > { %v866_v45 = vsub.f32 1.5, %v865_v44 }
 0x57e   : > { %v867_v46 = vmul.f32 %v1130_v41, %v866_v45 }
 0x580   : > { %v871_v49 = vsel %vm870_vm11, %v1130_v41, %v867_v46 }
 0x581   : > { %v872_v50 = vmul.f32 %v871_v49, %v860_v47 }
 0x583   : > { %v874_v52 = vmul.f32 %v873_v48, %v872_v50 }
 0x585   : > { %v876_v53 = vadd.f32 %v875_v51, %v874_v52 }
 0x587   : > { %v877_v54 = vadd.f32 %v876_v53, %v1333_v18 }
 0x589   : > { %878 = vst.msk [vmem:[%s296_s24] sm:$0xff] %vm352_vm0, %v877_v54 }
 0x58a   : > { %1158 = shalt.err (!%p1155_p3)
}
 0x58b   : > { %1081 = dma.vmem_to_hbm [thread:$0]  (%p1282_p5), %s893_s25, 128, %s895_s26, %s880_s9  }
 0x58c PF: > { %p1087_p4 = scmp.ge.s32.totalorder %s1193_s30, 2  ;;  %s906_s18 = sand.u32 1, %s1181_s27  }
 0x58d   : > { %s907_s22 = scalar_lea.sflag [#allocation3], %s906_s18 }
 0x58e   : > { %p1084_p7 = pnand %p1087_p4, %p1286_p6 }
 0x590   : > { %p1085_p8 = pneg %p1084_p7 }
 0x592   : > { %1176 = dma.done.wait (%p1085_p8), %s907_s22, 128  }
 0x593   : > { %1178 = vsyncadd (%p1085_p8), %s907_s22, 4294967168  ;;  %p18_p9 = scmp.ge.s32.totalorder %s1269_s11, 4   ;;  %s1470_s27 = smov %s1185_s28 }
 0x594   : > { %s1471_s28 = smov %s1189_s29  ;;  %s1472_s29 = smov %s1280_s14 }
 0x595   : > { %s1473_s30 = smov %s1269_s11  ;;  %20 = sbr.rel (!%p18_p9) target bundleno = 3 (0x3), region = 87 }
 0x59a   :  { %913 = vsyncpa [#allocation3], 1 }
 0x59b   :  { %915 = vsyncpa [#allocation3 + $0x1], 1 }

</bundles_post_ra>
